<compile_context>
chip_gen: v5e
topology: v5e:2x2
jax: 0.10.0
libtpu: 0.0.40
codegen_flags: <defaults>
</compile_context>

<pallas_src>
import functools

import jax
import jax.numpy as jnp
from jax.experimental import pallas as pl
from jax.experimental.pallas import tpu as pltpu


# ---------------------------------------------------------------------------
# Fused kernel
# ---------------------------------------------------------------------------
def _dilated_causal_conv(x, w2d, b, *, k, d):
    """Dilated causal conv1d as a single MXU matmul (values, all in VMEM).

    x   : (C_in, L) float32
    w2d : (C_out, k*C_in)  with row layout [tap j, channel ci] -> j*C_in + ci
    b   : (C_out, 1)
    """
    c_in, L = x.shape
    pad = (k - 1) * d
    if pad > 0:
        xpad = jnp.concatenate([jnp.zeros((c_in, pad), x.dtype), x], axis=1)
    else:
        xpad = x
    # Stack the k dilated taps along the contraction axis -> one matmul.
    xstack = jnp.concatenate([xpad[:, j * d: j * d + L] for j in range(k)], axis=0)
    return jnp.dot(w2d, xstack, preferred_element_type=jnp.float32) + b


def _tcn_stack_kernel(ids_ref, emb_ref, *refs, meta, kernel_size, c_in0):
    """Embedding gather + all TemporalBlocks for one batch element.

    ids_ref : (N, C_in0) int32 in SMEM (scalar prefetch)
    emb_ref : (vocab, 1, L) VMEM-resident embedding table
    refs    : per-level weights [w1_2d, b1, w2_2d, b2, (wd, bd)?] ... , then out_ref
    out_ref : (1, C_out_last, L)
    """
    out_ref = refs[-1]
    wrefs = refs[:-1]
    n = pl.program_id(0)

    # In-kernel embedding gather: one dynamic row read per input channel.
    rows = [emb_ref[ids_ref[n, c]] for c in range(c_in0)]      # each (1, L)
    x = jnp.concatenate(rows, axis=0).astype(jnp.float32)      # (C_in0, L)

    idx = 0
    for (dilation, has_ds) in meta:
        w1 = wrefs[idx][...]
        b1 = wrefs[idx + 1][...]
        w2 = wrefs[idx + 2][...]
        b2 = wrefs[idx + 3][...]
        idx += 4

        h = jnp.maximum(
            _dilated_causal_conv(x, w1, b1, k=kernel_size, d=dilation), 0.0)
        # TODO(synk): dropout1 / dropout2 omitted — eval-mode nn.Dropout is identity.
        y = jnp.maximum(
            _dilated_causal_conv(h, w2, b2, k=kernel_size, d=dilation), 0.0)

        if has_ds:
            wd = wrefs[idx][...]
            bd = wrefs[idx + 1][...]
            idx += 2
            res = jnp.dot(wd, x, preferred_element_type=jnp.float32) + bd
        else:
            res = x
        x = jnp.maximum(y + res, 0.0)

    out_ref[0] = x.astype(out_ref.dtype)


# ---------------------------------------------------------------------------
# Wrapper
# ---------------------------------------------------------------------------
def tcn_forward(token_ids, emb_table, tcn_params, kernel_size):
    """TCN.forward: tcn(embed(inputs)).

    token_ids : (N, input_size) int32 — embed produces (N, C_in, L) with
                C_in = input_size, L = embedding_dim (matching the module's
                'Inputs have to have dimension (N, C_in, L_in)' contract).
    emb_table : (vocab, embedding_dim) float32
    """
    N, c_in0 = token_ids.shape
    vocab, L = emb_table.shape
    emb3 = emb_table.reshape(vocab, 1, L)       # leading-axis gather friendly layout

    flat_args = []
    weight_specs = []
    meta = []

    ch_in = c_in0
    for i, (w1, b1, w2, b2, wd, bd) in enumerate(tcn_params):
        c_out, _, k = w1.shape
        # (C_out, C_in, k) -> (C_out, k*C_in), tap-major rows to match xstack.
        w1_2d = jnp.transpose(w1, (0, 2, 1)).reshape(c_out, k * ch_in)
        w2_2d = jnp.transpose(w2, (0, 2, 1)).reshape(c_out, k * c_out)
        level_args = [w1_2d, b1.reshape(c_out, 1), w2_2d, b2.reshape(c_out, 1)]
        has_ds = wd is not None
        if has_ds:
            level_args += [wd.reshape(c_out, ch_in), bd.reshape(c_out, 1)]
        for a in level_args:
            flat_args.append(a)
            weight_specs.append(pl.BlockSpec(a.shape, lambda n, ids: (0, 0)))
        meta.append((2 ** i, has_ds))
        ch_in = c_out

    c_last = ch_in
    kern = functools.partial(
        _tcn_stack_kernel, meta=tuple(meta), kernel_size=kernel_size, c_in0=c_in0)

    return pl.pallas_call(
        kern,
        out_shape=jax.ShapeDtypeStruct((N, c_last, L), emb_table.dtype),
        grid_spec=pltpu.PrefetchScalarGridSpec(
            num_scalar_prefetch=1,                     # token_ids -> SMEM
            grid=(N,),
            in_specs=[pl.BlockSpec((vocab, 1, L), lambda n, ids: (0, 0, 0))]
                     + weight_specs,
            out_specs=pl.BlockSpec((1, c_last, L), lambda n, ids: (n, 0, 0)),
        ),
        compiler_params=pltpu.CompilerParams(
            dimension_semantics=("parallel",)),        # 2 programs -> both v7x TCs
    )(token_ids, emb3, *flat_args)


# ---------------------------------------------------------------------------
# Pure-JAX reference (for correctness check)
# ---------------------------------------------------------------------------
def _ref_forward(token_ids, emb_table, tcn_params, kernel_size):
    x = emb_table[token_ids].astype(jnp.float32)        # (N, C_in, L)

    def conv(inp, w, b, d):
        k = w.shape[2]
        pad = (k - 1) * d
        Lr = inp.shape[2]
        xp = jnp.pad(inp, ((0, 0), (0, 0), (pad, 0)))
        out = jnp.zeros((inp.shape[0], w.shape[0], Lr), jnp.float32)
        for j in range(k):
            out = out + jnp.einsum("oc,ncl->nol", w[:, :, j],
                                   xp[:, :, j * d: j * d + Lr])
        return out + b[None, :, None]

    for i, (w1, b1, w2, b2, wd, bd) in enumerate(tcn_params):
        d = 2 ** i
        h = jax.nn.relu(conv(x, w1, b1, d))
        y = jax.nn.relu(conv(h, w2, b2, d))
        res = x if wd is None else conv(x, wd, bd, 1)
        x = jax.nn.relu(y + res)
    return x


# ---------------------------------------------------------------------------
# Deterministic parameter init (shapes from the module's __init__)
# ---------------------------------------------------------------------------
def init_tcn_params(key, input_size, num_channels, kernel_size):
    params = []
    ch_in = input_size
    for ch_out in num_channels:
        key, k1, k2, k3, k4, k5, k6 = jax.random.split(key, 7)
        w1 = 0.01 * jax.random.normal(k1, (ch_out, ch_in, kernel_size), jnp.float32)
        b1 = 0.01 * jax.random.normal(k2, (ch_out,), jnp.float32)
        w2 = 0.01 * jax.random.normal(k3, (ch_out, ch_out, kernel_size), jnp.float32)
        b2 = 0.01 * jax.random.normal(k4, (ch_out,), jnp.float32)
        if ch_in != ch_out:
            wd = 0.01 * jax.random.normal(k5, (ch_out, ch_in, 1), jnp.float32)
            bd = 0.01 * jax.random.normal(k6, (ch_out,), jnp.float32)
        else:
            wd, bd = None, None
        params.append((w1, b1, w2, b2, wd, bd))
        ch_in = ch_out
    return params


# ---------------------------------------------------------------------------
if __name__ == "__main__":
    key = jax.random.PRNGKey(0)
    N = 2                 # batch
    input_size = 8        # C_in for the TCN (rows of token ids)
    embed_dim = 16        # L_in (embedding dim becomes the conv length axis)
    vocab = 50
    num_channels = [16, 16]
    kernel_size = 2

    k_emb, k_tok, k_par = jax.random.split(key, 3)
    emb_table = 0.1 * jax.random.normal(k_emb, (vocab, embed_dim), jnp.float32)
    token_ids = jax.random.randint(k_tok, (N, input_size), 0, vocab)
    tcn_params = init_tcn_params(k_par, input_size, num_channels, kernel_size)

    fwd = jax.jit(functools.partial(tcn_forward, kernel_size=kernel_size))
    out = jax.block_until_ready(fwd(token_ids, emb_table, tcn_params))
    assert out.shape == (N, num_channels[-1], embed_dim), out.shape

    ref = _ref_forward(token_ids, emb_table, tcn_params, kernel_size)
    assert jnp.allclose(out, ref, rtol=1e-4, atol=1e-5), float(
        jnp.max(jnp.abs(out - ref)))

    print("KERNEL_OK")
</pallas_src>

<mosaic_0001>
module attributes {stable_mosaic.version = 11 : i64} {
  func.func @_tcn_stack_kernel(%arg0: i32, %arg1: memref<2x8xi32, #tpu.memory_space<smem>>, %arg2: memref<50x1x16xf32, #tpu.memory_space<vmem>>, %arg3: memref<16x16xf32, #tpu.memory_space<vmem>>, %arg4: memref<16x1xf32, #tpu.memory_space<vmem>>, %arg5: memref<16x32xf32, #tpu.memory_space<vmem>>, %arg6: memref<16x1xf32, #tpu.memory_space<vmem>>, %arg7: memref<16x8xf32, #tpu.memory_space<vmem>>, %arg8: memref<16x1xf32, #tpu.memory_space<vmem>>, %arg9: memref<16x32xf32, #tpu.memory_space<vmem>>, %arg10: memref<16x1xf32, #tpu.memory_space<vmem>>, %arg11: memref<16x32xf32, #tpu.memory_space<vmem>>, %arg12: memref<16x1xf32, #tpu.memory_space<vmem>>, %arg13: memref<1x16x16xf32, #tpu.memory_space<vmem>>) attributes {dimension_semantics = [#tpu.dimension_semantics<parallel>], iteration_bounds = array<i64: 2>, scalar_prefetch = 1 : i64, scratch_operands = 0 : i64, tpu.core_type = #tpu.core_type<tc>, window_params = [{pipeline_mode = #tpu.pipeline_mode<synchronous>, transform_indices = @transform_0, window_bounds = array<i64: 50, 1, 16>}, {pipeline_mode = #tpu.pipeline_mode<synchronous>, transform_indices = @transform_1, window_bounds = array<i64: 16, 16>}, {pipeline_mode = #tpu.pipeline_mode<synchronous>, transform_indices = @transform_2, window_bounds = array<i64: 16, 1>}, {pipeline_mode = #tpu.pipeline_mode<synchronous>, transform_indices = @transform_3, window_bounds = array<i64: 16, 32>}, {pipeline_mode = #tpu.pipeline_mode<synchronous>, transform_indices = @transform_4, window_bounds = array<i64: 16, 1>}, {pipeline_mode = #tpu.pipeline_mode<synchronous>, transform_indices = @transform_5, window_bounds = array<i64: 16, 8>}, {pipeline_mode = #tpu.pipeline_mode<synchronous>, transform_indices = @transform_6, window_bounds = array<i64: 16, 1>}, {pipeline_mode = #tpu.pipeline_mode<synchronous>, transform_indices = @transform_7, window_bounds = array<i64: 16, 32>}, {pipeline_mode = #tpu.pipeline_mode<synchronous>, transform_indices = @transform_8, window_bounds = array<i64: 16, 1>}, {pipeline_mode = #tpu.pipeline_mode<synchronous>, transform_indices = @transform_9, window_bounds = array<i64: 16, 32>}, {pipeline_mode = #tpu.pipeline_mode<synchronous>, transform_indices = @transform_10, window_bounds = array<i64: 16, 1>}, {transform_indices = @transform_11, window_bounds = array<i64: 1, 16, 16>}]} {
    %0 = arith.index_cast %arg0 : i32 to index
    %c0 = arith.constant 0 : index
    %1 = memref.load %arg1[%0, %c0] : memref<2x8xi32, #tpu.memory_space<smem>>
    %2 = arith.index_cast %1 : i32 to index
    %c0_0 = arith.constant 0 : index
    %c0_1 = arith.constant 0 : index
    %3 = vector.load %arg2[%2, %c0_0, %c0_1] : memref<50x1x16xf32, #tpu.memory_space<vmem>>, vector<1x1x16xf32>
    %4 = vector.shape_cast %3 : vector<1x1x16xf32> to vector<1x16xf32>
    %5 = arith.index_cast %arg0 : i32 to index
    %c1 = arith.constant 1 : index
    %6 = memref.load %arg1[%5, %c1] : memref<2x8xi32, #tpu.memory_space<smem>>
    %7 = arith.index_cast %6 : i32 to index
    %c0_2 = arith.constant 0 : index
    %c0_3 = arith.constant 0 : index
    %8 = vector.load %arg2[%7, %c0_2, %c0_3] : memref<50x1x16xf32, #tpu.memory_space<vmem>>, vector<1x1x16xf32>
    %9 = vector.shape_cast %8 : vector<1x1x16xf32> to vector<1x16xf32>
    %10 = arith.index_cast %arg0 : i32 to index
    %c2 = arith.constant 2 : index
    %11 = memref.load %arg1[%10, %c2] : memref<2x8xi32, #tpu.memory_space<smem>>
    %12 = arith.index_cast %11 : i32 to index
    %c0_4 = arith.constant 0 : index
    %c0_5 = arith.constant 0 : index
    %13 = vector.load %arg2[%12, %c0_4, %c0_5] : memref<50x1x16xf32, #tpu.memory_space<vmem>>, vector<1x1x16xf32>
    %14 = vector.shape_cast %13 : vector<1x1x16xf32> to vector<1x16xf32>
    %15 = arith.index_cast %arg0 : i32 to index
    %c3 = arith.constant 3 : index
    %16 = memref.load %arg1[%15, %c3] : memref<2x8xi32, #tpu.memory_space<smem>>
    %17 = arith.index_cast %16 : i32 to index
    %c0_6 = arith.constant 0 : index
    %c0_7 = arith.constant 0 : index
    %18 = vector.load %arg2[%17, %c0_6, %c0_7] : memref<50x1x16xf32, #tpu.memory_space<vmem>>, vector<1x1x16xf32>
    %19 = vector.shape_cast %18 : vector<1x1x16xf32> to vector<1x16xf32>
    %20 = arith.index_cast %arg0 : i32 to index
    %c4 = arith.constant 4 : index
    %21 = memref.load %arg1[%20, %c4] : memref<2x8xi32, #tpu.memory_space<smem>>
    %22 = arith.index_cast %21 : i32 to index
    %c0_8 = arith.constant 0 : index
    %c0_9 = arith.constant 0 : index
    %23 = vector.load %arg2[%22, %c0_8, %c0_9] : memref<50x1x16xf32, #tpu.memory_space<vmem>>, vector<1x1x16xf32>
    %24 = vector.shape_cast %23 : vector<1x1x16xf32> to vector<1x16xf32>
    %25 = arith.index_cast %arg0 : i32 to index
    %c5 = arith.constant 5 : index
    %26 = memref.load %arg1[%25, %c5] : memref<2x8xi32, #tpu.memory_space<smem>>
    %27 = arith.index_cast %26 : i32 to index
    %c0_10 = arith.constant 0 : index
    %c0_11 = arith.constant 0 : index
    %28 = vector.load %arg2[%27, %c0_10, %c0_11] : memref<50x1x16xf32, #tpu.memory_space<vmem>>, vector<1x1x16xf32>
    %29 = vector.shape_cast %28 : vector<1x1x16xf32> to vector<1x16xf32>
    %30 = arith.index_cast %arg0 : i32 to index
    %c6 = arith.constant 6 : index
    %31 = memref.load %arg1[%30, %c6] : memref<2x8xi32, #tpu.memory_space<smem>>
    %32 = arith.index_cast %31 : i32 to index
    %c0_12 = arith.constant 0 : index
    %c0_13 = arith.constant 0 : index
    %33 = vector.load %arg2[%32, %c0_12, %c0_13] : memref<50x1x16xf32, #tpu.memory_space<vmem>>, vector<1x1x16xf32>
    %34 = vector.shape_cast %33 : vector<1x1x16xf32> to vector<1x16xf32>
    %35 = arith.index_cast %arg0 : i32 to index
    %c7 = arith.constant 7 : index
    %36 = memref.load %arg1[%35, %c7] : memref<2x8xi32, #tpu.memory_space<smem>>
    %37 = arith.index_cast %36 : i32 to index
    %c0_14 = arith.constant 0 : index
    %c0_15 = arith.constant 0 : index
    %38 = vector.load %arg2[%37, %c0_14, %c0_15] : memref<50x1x16xf32, #tpu.memory_space<vmem>>, vector<1x1x16xf32>
    %39 = vector.shape_cast %38 : vector<1x1x16xf32> to vector<1x16xf32>
    %40 = tpu.concatenate %4, %9, %14, %19, %24, %29, %34, %39 in 0 : vector<1x16xf32>, vector<1x16xf32>, vector<1x16xf32>, vector<1x16xf32>, vector<1x16xf32>, vector<1x16xf32>, vector<1x16xf32>, vector<1x16xf32> -> vector<8x16xf32>
    %c0_16 = arith.constant 0 : index
    %c0_17 = arith.constant 0 : index
    %41 = vector.load %arg3[%c0_16, %c0_17] : memref<16x16xf32, #tpu.memory_space<vmem>>, vector<16x16xf32>
    %c0_18 = arith.constant 0 : index
    %c0_19 = arith.constant 0 : index
    %42 = vector.load %arg4[%c0_18, %c0_19] : memref<16x1xf32, #tpu.memory_space<vmem>>, vector<16x1xf32>
    %c0_20 = arith.constant 0 : index
    %c0_21 = arith.constant 0 : index
    %43 = vector.load %arg5[%c0_20, %c0_21] : memref<16x32xf32, #tpu.memory_space<vmem>>, vector<16x32xf32>
    %c0_22 = arith.constant 0 : index
    %c0_23 = arith.constant 0 : index
    %44 = vector.load %arg6[%c0_22, %c0_23] : memref<16x1xf32, #tpu.memory_space<vmem>>, vector<16x1xf32>
    %cst = arith.constant 0.000000e+00 : f32
    %45 = vector.broadcast %cst : f32 to vector<8x1xf32>
    %46 = tpu.concatenate %45, %40 in 1 : vector<8x1xf32>, vector<8x16xf32> -> vector<8x17xf32>
    %47 = vector.extract_strided_slice %46 {offsets = [0, 0], sizes = [8, 16], strides = [1, 1]} : vector<8x17xf32> to vector<8x16xf32>
    %48 = vector.extract_strided_slice %46 {offsets = [0, 1], sizes = [8, 16], strides = [1, 1]} : vector<8x17xf32> to vector<8x16xf32>
    %49 = tpu.concatenate %47, %48 in 0 : vector<8x16xf32>, vector<8x16xf32> -> vector<16x16xf32>
    %cst_24 = arith.constant dense<0.000000e+00> : vector<16x16xf32>
    %50 = tpu.matmul %41, %49, %cst_24 {dimension_numbers = #tpu.dot_dimension_numbers<[1], [0], [0], [1], [0, 0, 1, 1], [], []>} : vector<16x16xf32>, vector<16x16xf32>, vector<16x16xf32> -> vector<16x16xf32>
    %51 = vector.broadcast %42 : vector<16x1xf32> to vector<16x16xf32>
    %52 = arith.addf %50, %51 : vector<16x16xf32>
    %cst_25 = arith.constant 0.000000e+00 : f32
    %53 = vector.broadcast %cst_25 : f32 to vector<16x16xf32>
    %54 = arith.maximumf %52, %53 : vector<16x16xf32>
    %cst_26 = arith.constant 0.000000e+00 : f32
    %55 = vector.broadcast %cst_26 : f32 to vector<16x1xf32>
    %56 = tpu.concatenate %55, %54 in 1 : vector<16x1xf32>, vector<16x16xf32> -> vector<16x17xf32>
    %57 = vector.extract_strided_slice %56 {offsets = [0, 0], sizes = [16, 16], strides = [1, 1]} : vector<16x17xf32> to vector<16x16xf32>
    %58 = vector.extract_strided_slice %56 {offsets = [0, 1], sizes = [16, 16], strides = [1, 1]} : vector<16x17xf32> to vector<16x16xf32>
    %59 = tpu.concatenate %57, %58 in 0 : vector<16x16xf32>, vector<16x16xf32> -> vector<32x16xf32>
    %cst_27 = arith.constant dense<0.000000e+00> : vector<16x16xf32>
    %60 = tpu.matmul %43, %59, %cst_27 {dimension_numbers = #tpu.dot_dimension_numbers<[1], [0], [0], [1], [0, 0, 1, 1], [], []>} : vector<16x32xf32>, vector<32x16xf32>, vector<16x16xf32> -> vector<16x16xf32>
    %61 = vector.broadcast %44 : vector<16x1xf32> to vector<16x16xf32>
    %62 = arith.addf %60, %61 : vector<16x16xf32>
    %cst_28 = arith.constant 0.000000e+00 : f32
    %63 = vector.broadcast %cst_28 : f32 to vector<16x16xf32>
    %64 = arith.maximumf %62, %63 : vector<16x16xf32>
    %c0_29 = arith.constant 0 : index
    %c0_30 = arith.constant 0 : index
    %65 = vector.load %arg7[%c0_29, %c0_30] : memref<16x8xf32, #tpu.memory_space<vmem>>, vector<16x8xf32>
    %c0_31 = arith.constant 0 : index
    %c0_32 = arith.constant 0 : index
    %66 = vector.load %arg8[%c0_31, %c0_32] : memref<16x1xf32, #tpu.memory_space<vmem>>, vector<16x1xf32>
    %cst_33 = arith.constant dense<0.000000e+00> : vector<16x16xf32>
    %67 = tpu.matmul %65, %40, %cst_33 {dimension_numbers = #tpu.dot_dimension_numbers<[1], [0], [0], [1], [0, 0, 1, 1], [], []>} : vector<16x8xf32>, vector<8x16xf32>, vector<16x16xf32> -> vector<16x16xf32>
    %68 = vector.broadcast %66 : vector<16x1xf32> to vector<16x16xf32>
    %69 = arith.addf %67, %68 : vector<16x16xf32>
    %70 = arith.addf %64, %69 : vector<16x16xf32>
    %cst_34 = arith.constant 0.000000e+00 : f32
    %71 = vector.broadcast %cst_34 : f32 to vector<16x16xf32>
    %72 = arith.maximumf %70, %71 : vector<16x16xf32>
    %c0_35 = arith.constant 0 : index
    %c0_36 = arith.constant 0 : index
    %73 = vector.load %arg9[%c0_35, %c0_36] : memref<16x32xf32, #tpu.memory_space<vmem>>, vector<16x32xf32>
    %c0_37 = arith.constant 0 : index
    %c0_38 = arith.constant 0 : index
    %74 = vector.load %arg10[%c0_37, %c0_38] : memref<16x1xf32, #tpu.memory_space<vmem>>, vector<16x1xf32>
    %c0_39 = arith.constant 0 : index
    %c0_40 = arith.constant 0 : index
    %75 = vector.load %arg11[%c0_39, %c0_40] : memref<16x32xf32, #tpu.memory_space<vmem>>, vector<16x32xf32>
    %c0_41 = arith.constant 0 : index
    %c0_42 = arith.constant 0 : index
    %76 = vector.load %arg12[%c0_41, %c0_42] : memref<16x1xf32, #tpu.memory_space<vmem>>, vector<16x1xf32>
    %cst_43 = arith.constant 0.000000e+00 : f32
    %77 = vector.broadcast %cst_43 : f32 to vector<16x2xf32>
    %78 = tpu.concatenate %77, %72 in 1 : vector<16x2xf32>, vector<16x16xf32> -> vector<16x18xf32>
    %79 = vector.extract_strided_slice %78 {offsets = [0, 0], sizes = [16, 16], strides = [1, 1]} : vector<16x18xf32> to vector<16x16xf32>
    %80 = vector.extract_strided_slice %78 {offsets = [0, 2], sizes = [16, 16], strides = [1, 1]} : vector<16x18xf32> to vector<16x16xf32>
    %81 = tpu.concatenate %79, %80 in 0 : vector<16x16xf32>, vector<16x16xf32> -> vector<32x16xf32>
    %cst_44 = arith.constant dense<0.000000e+00> : vector<16x16xf32>
    %82 = tpu.matmul %73, %81, %cst_44 {dimension_numbers = #tpu.dot_dimension_numbers<[1], [0], [0], [1], [0, 0, 1, 1], [], []>} : vector<16x32xf32>, vector<32x16xf32>, vector<16x16xf32> -> vector<16x16xf32>
    %83 = vector.broadcast %74 : vector<16x1xf32> to vector<16x16xf32>
    %84 = arith.addf %82, %83 : vector<16x16xf32>
    %cst_45 = arith.constant 0.000000e+00 : f32
    %85 = vector.broadcast %cst_45 : f32 to vector<16x16xf32>
    %86 = arith.maximumf %84, %85 : vector<16x16xf32>
    %cst_46 = arith.constant 0.000000e+00 : f32
    %87 = vector.broadcast %cst_46 : f32 to vector<16x2xf32>
    %88 = tpu.concatenate %87, %86 in 1 : vector<16x2xf32>, vector<16x16xf32> -> vector<16x18xf32>
    %89 = vector.extract_strided_slice %88 {offsets = [0, 0], sizes = [16, 16], strides = [1, 1]} : vector<16x18xf32> to vector<16x16xf32>
    %90 = vector.extract_strided_slice %88 {offsets = [0, 2], sizes = [16, 16], strides = [1, 1]} : vector<16x18xf32> to vector<16x16xf32>
    %91 = tpu.concatenate %89, %90 in 0 : vector<16x16xf32>, vector<16x16xf32> -> vector<32x16xf32>
    %cst_47 = arith.constant dense<0.000000e+00> : vector<16x16xf32>
    %92 = tpu.matmul %75, %91, %cst_47 {dimension_numbers = #tpu.dot_dimension_numbers<[1], [0], [0], [1], [0, 0, 1, 1], [], []>} : vector<16x32xf32>, vector<32x16xf32>, vector<16x16xf32> -> vector<16x16xf32>
    %93 = vector.broadcast %76 : vector<16x1xf32> to vector<16x16xf32>
    %94 = arith.addf %92, %93 : vector<16x16xf32>
    %cst_48 = arith.constant 0.000000e+00 : f32
    %95 = vector.broadcast %cst_48 : f32 to vector<16x16xf32>
    %96 = arith.maximumf %94, %95 : vector<16x16xf32>
    %97 = arith.addf %96, %72 : vector<16x16xf32>
    %cst_49 = arith.constant 0.000000e+00 : f32
    %98 = vector.broadcast %cst_49 : f32 to vector<16x16xf32>
    %99 = arith.maximumf %97, %98 : vector<16x16xf32>
    %c0_50 = arith.constant 0 : index
    %c0_51 = arith.constant 0 : index
    %c0_52 = arith.constant 0 : index
    %100 = vector.load %arg13[%c0_50, %c0_51, %c0_52] : memref<1x16x16xf32, #tpu.memory_space<vmem>>, vector<1x16x16xf32>
    %101 = vector.shape_cast %100 : vector<1x16x16xf32> to vector<16x16xf32>
    %102 = vector.shape_cast %99 : vector<16x16xf32> to vector<1x16x16xf32>
    tpu.vector_store %arg13[%c0_50, %c0_51, %c0_52], %102 {strides = array<i32>} : memref<1x16x16xf32, #tpu.memory_space<vmem>>, vector<1x16x16xf32>,
    return
  }
  func.func @transform_0(%arg0: i32, %arg1: memref<2x8xi32, #tpu.memory_space<smem>>) -> (i32, i32, i32) {
    %c0_i32 = arith.constant 0 : i32
    %c0_i32_0 = arith.constant 0 : i32
    %c0_i32_1 = arith.constant 0 : i32
    %c0_i32_2 = arith.constant 0 : i32
    return %c0_i32, %c0_i32_0, %c0_i32_1 : i32, i32, i32
  }
  func.func @transform_1(%arg0: i32, %arg1: memref<2x8xi32, #tpu.memory_space<smem>>) -> (i32, i32) {
    %c0_i32 = arith.constant 0 : i32
    %c0_i32_0 = arith.constant 0 : i32
    %c0_i32_1 = arith.constant 0 : i32
    return %c0_i32, %c0_i32_0 : i32, i32
  }
  func.func @transform_2(%arg0: i32, %arg1: memref<2x8xi32, #tpu.memory_space<smem>>) -> (i32, i32) {
    %c0_i32 = arith.constant 0 : i32
    %c0_i32_0 = arith.constant 0 : i32
    %c0_i32_1 = arith.constant 0 : i32
    return %c0_i32, %c0_i32_0 : i32, i32
  }
  func.func @transform_3(%arg0: i32, %arg1: memref<2x8xi32, #tpu.memory_space<smem>>) -> (i32, i32) {
    %c0_i32 = arith.constant 0 : i32
    %c0_i32_0 = arith.constant 0 : i32
    %c0_i32_1 = arith.constant 0 : i32
    return %c0_i32, %c0_i32_0 : i32, i32
  }
  func.func @transform_4(%arg0: i32, %arg1: memref<2x8xi32, #tpu.memory_space<smem>>) -> (i32, i32) {
    %c0_i32 = arith.constant 0 : i32
    %c0_i32_0 = arith.constant 0 : i32
    %c0_i32_1 = arith.constant 0 : i32
    return %c0_i32, %c0_i32_0 : i32, i32
  }
  func.func @transform_5(%arg0: i32, %arg1: memref<2x8xi32, #tpu.memory_space<smem>>) -> (i32, i32) {
    %c0_i32 = arith.constant 0 : i32
    %c0_i32_0 = arith.constant 0 : i32
    %c0_i32_1 = arith.constant 0 : i32
    return %c0_i32, %c0_i32_0 : i32, i32
  }
  func.func @transform_6(%arg0: i32, %arg1: memref<2x8xi32, #tpu.memory_space<smem>>) -> (i32, i32) {
    %c0_i32 = arith.constant 0 : i32
    %c0_i32_0 = arith.constant 0 : i32
    %c0_i32_1 = arith.constant 0 : i32
    return %c0_i32, %c0_i32_0 : i32, i32
  }
  func.func @transform_7(%arg0: i32, %arg1: memref<2x8xi32, #tpu.memory_space<smem>>) -> (i32, i32) {
    %c0_i32 = arith.constant 0 : i32
    %c0_i32_0 = arith.constant 0 : i32
    %c0_i32_1 = arith.constant 0 : i32
    return %c0_i32, %c0_i32_0 : i32, i32
  }
  func.func @transform_8(%arg0: i32, %arg1: memref<2x8xi32, #tpu.memory_space<smem>>) -> (i32, i32) {
    %c0_i32 = arith.constant 0 : i32
    %c0_i32_0 = arith.constant 0 : i32
    %c0_i32_1 = arith.constant 0 : i32
    return %c0_i32, %c0_i32_0 : i32, i32
  }
  func.func @transform_9(%arg0: i32, %arg1: memref<2x8xi32, #tpu.memory_space<smem>>) -> (i32, i32) {
    %c0_i32 = arith.constant 0 : i32
    %c0_i32_0 = arith.constant 0 : i32
    %c0_i32_1 = arith.constant 0 : i32
    return %c0_i32, %c0_i32_0 : i32, i32
  }
  func.func @transform_10(%arg0: i32, %arg1: memref<2x8xi32, #tpu.memory_space<smem>>) -> (i32, i32) {
    %c0_i32 = arith.constant 0 : i32
    %c0_i32_0 = arith.constant 0 : i32
    %c0_i32_1 = arith.constant 0 : i32
    return %c0_i32, %c0_i32_0 : i32, i32
  }
  func.func @transform_11(%arg0: i32, %arg1: memref<2x8xi32, #tpu.memory_space<smem>>) -> (i32, i32, i32) {
    %c0_i32 = arith.constant 0 : i32
    %c0_i32_0 = arith.constant 0 : i32
    %c0_i32_1 = arith.constant 0 : i32
    return %arg0, %c0_i32, %c0_i32_0 : i32, i32, i32
  }
}

</mosaic_0001>

<bundles_post_ra>
// kernel: tcn_forward.1
= control target key start
LH: loop header
LB: loop body
LE: loop exit
PB: predicated region body
PF: predicated region fallthrough
CT: control target
= control target key end

     0   :  { %s1002_s24 = smov [#allocation3]   ;;  %s1311_s0 = inlined_call_operand.vmem [shape: s32[2,8], index: 0, kind: input, shape index: {}]   ;;  %s1312_s1 = inlined_call_operand.vmem [shape: f32[50,1,16], index: 1, kind: input, shape index: {}]   ;;  %s1313_s2 = inlined_call_operand.vmem [shape: f32[16,16], index: 2, kind: input, shape index: {}]   ;;  %s1314_s3 = inlined_call_operand.vmem [shape: f32[16,1], index: 3, kind: input, shape index: {}]   ;;  %s1315_s4 = inlined_call_operand.vmem [shape: f32[16,32], index: 4, kind: input, shape index: {}]   ;;  %s1316_s5 = inlined_call_operand.vmem [shape: f32[16,1], index: 5, kind: input, shape index: {}]   ;;  %s1317_s6 = inlined_call_operand.vmem [shape: f32[16,8], index: 6, kind: input, shape index: {}]   ;;  %s1318_s7 = inlined_call_operand.vmem [shape: f32[16,1], index: 7, kind: input, shape index: {}]   ;;  %s1319_s8 = inlined_call_operand.vmem [shape: f32[16,32], index: 8, kind: input, shape index: {}]   ;;  %s1320_s9 = inlined_call_operand.vmem [shape: f32[16,1], index: 9, kind: input, shape index: {}]   ;;  %s1321_s10 = inlined_call_operand.vmem [shape: f32[16,32], index: 10, kind: input, shape index: {}]   ;;  %s1322_s11 = inlined_call_operand.vmem [shape: f32[16,1], index: 11, kind: input, shape index: {}]   ;;  %s1323_s12 = inlined_call_operand.hbm [shape: f32[2,16,16], index: 12, kind: output, shape index: {}]  }
   0x1   :  { %1337 = sst [smem:[#allocation17_spill]] %s1321_s10  ;;  %s18_s23 = sshll.u32 %s1311_s0, 4  ;;  %s19_s23 = int_to_ptr.vmem [resolvable:$true] %s18_s23 }
   0x2   :  { %1338 = sst [smem:[#allocation18_spill]] %s1322_s11 }
   0x3   :  { %1339 = sst [smem:[#allocation19_spill]] %s1323_s12 }
   0x4   :  { %21 = dma.vmem_to_smem %s19_s23, 32, %s1002_s24, [#allocation2] }
   0x5   :  { %980 = dma.done.wait [#allocation2], 32 }
   0x6   :  { %981 = vsyncadd [#allocation2], 4294967264 }
   0x7   :  { %24 = sfence }
   0x8   :  { %25 = vsyncpa [#allocation5], 0 }
   0x9   :  { %27 = vsyncpa [#allocation5 + $0x1], 0  ;;  %s1078_s25 = smov 0   ;;  %s1080_s26 = smov 0  }
   0xa   :  { %s1082_s27 = smov 0   ;;  %s1084_s28 = smov 0  }
   0xb LB: > { %1340 = sst [smem:[#allocation8_spill]] %s988_s25  ;;  %s1099_s0 = sadd.s32 4294967295, %s1000_s28   ;;  %s1000_s28 = sphi %s1084_s28, %s1365_s28   ;;  %s996_s27 = sphi %s1082_s27, %s1368_s27   ;;  %s992_s26 = sphi %s1080_s26, %s1367_s26   ;;  %s988_s25 = sphi %s1078_s25, %s1366_s25  }
   0xc   : > { %1341 = sst [smem:[#allocation9_spill]] %s992_s26  ;;  %s816_s29 = sadd.s32 4294967294, %s1000_s28  }
   0xd   : > { %1342 = sst [smem:[#allocation10_spill]] %s996_s27  ;;  %s1103_s30 = sadd.s32 1, %s1000_s28  }
   0xe   : > { %1343 = sst [smem:[#allocation11_spill]] %s1000_s28  ;;  %s271_s13 = sadd.s32 1, %s996_s27 }
   0xf   : > { %1344 = sst [smem:[#allocation12_spill]] %s1099_s0  ;;  %s268_s14 = ssub.s32 %s1000_s28, %s1103_s30 }
  0x10   : > { %1345 = sst [smem:[#allocation13_spill]] %s1103_s30  ;;  %p281_p0 = scmp.ne.s32.totalorder %s996_s27, %s992_s26 }
  0x11   : > { %p269_p1 = scmp.eq.s32.totalorder %s268_s14, 0  ;;  %p282_p2 = scmp.eq.s32.totalorder %s1099_s0, 1 }
  0x12   : > { %p287_p3 = scmp.ne.s32.totalorder %s992_s26, %s988_s25  ;;  %p288_p4 = scmp.eq.s32.totalorder %s816_s29, 1 }
  0x13   : > { %s1114_s15 = scalar_select %p269_p1, %s996_s27, %s271_s13  }
  0x14   : > { %p1116_p5 = por %p282_p2, %p281_p0  ;;  %p1120_p6 = por %p288_p4, %p287_p3 }
  0x15   : > { %1346 = sst [smem:[#allocation14_spill]] %s1114_s15  ;;  %p818_p7 = scmp.ge.s32.totalorder %s1000_s28, 1 }
  0x16   : > { %s1347_s16 = scalar_select %p1116_p5, 1, 0 }
  0x17   : > { %s1349_s17 = scalar_select %p1120_p6, 1, 0 }
  0x18   : > { %1348 = sst [smem:[#allocation15_spill]] %s1347_s16  ;;  %p339_p8 = scmp.lt.s32.totalorder %s1000_s28, 3 }
  0x19   : > { %1350 = sst [smem:[#allocation16_spill]] %s1349_s17 }
  0x1a   : > { %p340_p9 = pnand %p818_p7, %p339_p8 }
  0x1b   : > { %s820_s18 = sshll.u32 (!%p340_p9), %s1099_s0, 7 }
  0x1c   : > { %343 = sbr.rel (%p340_p9) target bundleno = 1525 (0x5f5), region = 64  ;;  %s375_s19 = sld [smem:[#allocation3 + %s820_s18]] (!%p340_p9) }
  0x1d   : > { %s378_s20 = sadd.s32 (!%p340_p9), 1, %s820_s18  ;;  %s382_s22 = sadd.s32 (!%p340_p9), 2, %s820_s18 }
  0x1e   : > { %s379_s21 = sld [smem:[#allocation3 + %s378_s20]] (!%p340_p9)  ;;  %s386_s24 = sadd.s32 (!%p340_p9), 3, %s820_s18 }
  0x1f   : > { %s383_s23 = sld [smem:[#allocation3 + %s382_s22]] (!%p340_p9)  ;;  %s390_s13 = sadd.s32 (!%p340_p9), 4, %s820_s18 }
  0x20   : > { %s387_s29 = sld [smem:[#allocation3 + %s386_s24]] (!%p340_p9)  ;;  %s394_s15 = sadd.s32 (!%p340_p9), 5, %s820_s18 }
  0x21   : > { %s391_s14 = sld [smem:[#allocation3 + %s390_s13]]  ;;  %s398_s30 = sadd.s32 6, %s820_s18  ;;  %vm427_vm0 = vcmask 1040384   ;;  %vm429_vm1 = vcmask 1041408   ;;  %vm431_vm2 = vcmask 1042432   ;;  %vm433_vm3 = vcmask 1043456  }
  0x22   : > { %s395_s27 = sld [smem:[#allocation3 + %s394_s15]]  ;;  %s376_s28 = scalar_lea.vmem %s1312_s1, %s375_s19  ;;  %vm435_vm4 = vcmask 1044480   ;;  %vm437_vm5 = vcmask 1045504   ;;  %vm439_vm6 = vcmask 1046528   ;;  %v444_v15 = vld [vmem:[%s1314_s3 + $0x8] sm:$0xff]  ;;  %v1004_v16 = vmov 0  }
  0x23   : > { %s399_s16 = sld [smem:[#allocation3 + %s398_s30]]  ;;  %v377_v0 = vld [vmem:[%s376_s28] sm:$0x1]  ;;  %s402_s20 = sadd.s32 7, %s820_s18  ;;  %899 = vset.pattern.permute.xlu1 %v1004_v16  ;;  %906 = vset.pattern.permute.xlu0 %v1004_v16  ;;  %vm453_vm7 = vcmask 7168   ;;  %v448_v20 = vld [vmem:[%s1316_s5 + $0x8] sm:$0xff] }
  0x24   : > { %s380_s0 = scalar_lea.vmem %s1312_s1, %s379_s21  ;;  %s403_s13 = sld [smem:[#allocation3 + %s402_s20]]  ;;  %466 = vperm.xlu1 %899, %v444_v15   ;;  %905 = vset.pattern.permute.xlu2 %v1004_v16  ;;  %v443_v19 = vld [vmem:[%s1314_s3] sm:$0xff]  ;;  %vm1167_vm8 = vmneg %vm453_vm7  ;;  %vm469_vm9 = vcmask 130048   ;;  %v442_v25 = vld [vmem:[%s1313_s2 + $0x8] sm:$0xff]  ;;  %vm575_vm10 = vcmask 64512   ;;  %vm529_vm11 = vcmask 261120  }
  0x25   : > { %s384_s24 = scalar_lea.vmem %s1312_s1, %s383_s23  ;;  %v917_v1 = vld [vmem:[%s380_s0] ss:$0 sm:$0xff]  ;;  %v562_v40 = vld [vmem:[%s1317_s6 + $0x8] sm:$0xff]  ;;  %vm625_vm12 = vcmask 15360   ;;  %s1355_s0 = sld [smem:[#allocation18_spill]] }
  0x26   : > { %s388_s25 = scalar_lea.vmem %s1312_s1, %s387_s29  ;;  %v918_v2 = vld [vmem:[%s384_s24] ss:$0 sm:$0xff]  ;;  %v428_v4 = vsel %vm427_vm0, %v377_v0, %v917_v1  ;;  %v564_v41 = vld [vmem:[%s1318_s7 + $0x8] sm:$0xff]  ;;  %s1006_s24 = smov 2   ;;  %vm1234_vm13 = vmneg %vm625_vm12 }
  0x27   : > { %s392_s10 = scalar_lea.vmem %s1312_s1, %s391_s14  ;;  %v919_v3 = vld [vmem:[%s388_s25] ss:$0 sm:$0xff]  ;;  %v430_v6 = vsel %vm429_vm1, %v428_v4, %v918_v2  ;;  %s1005_s14 = smov 127   ;;  %v612_v43 = vld [vmem:[%s1320_s9 + $0x8] sm:$0xff] }
  0x28   : > { %s396_s26 = scalar_lea.vmem %s1312_s1, %s395_s27  ;;  %v920_v5 = vld [vmem:[%s392_s10] ss:$0 sm:$0xff]  ;;  %v432_v8 = vsel %vm431_vm2, %v430_v6, %v919_v3  ;;  %s1003_s27 = smov 1   ;;  %v446_v48 = vld [vmem:[%s1315_s4 + $0x8] sm:$0xff] }
  0x29   : > { %s400_s11 = scalar_lea.vmem %s1312_s1, %s399_s16  ;;  %v921_v7 = vld [vmem:[%s396_s26] ss:$0 sm:$0xff]  ;;  %v434_v10 = vsel %vm433_vm3, %v432_v8, %v920_v5  ;;  %s1007_s25 = smov 126  }
  0x2a   : > { %v922_v9 = vld [vmem:[%s400_s11] ss:$0 sm:$0xff]  ;;  %s404_s23 = scalar_lea.vmem %s1312_s1, %s403_s13  ;;  %v436_v11 = vsel %vm435_vm4, %v434_v10, %v921_v7  ;;  %s1356_s19 = sld [smem:[#allocation9_spill]] }
  0x2b   : > { %v923_v12 = vld [vmem:[%s404_s23] ss:$0 sm:$0xff]  ;;  %v438_v13 = vsel %vm437_vm5, %v436_v11, %v922_v9  ;;  %s1357_s21 = sld [smem:[#allocation12_spill]] }
  0x2c   : > { %v440_v14 = vsel %vm439_vm6, %v438_v13, %v923_v12  ;;  %461 = vperm.xlu1 %899, %v443_v19   ;;  %v563_v21 = vld [vmem:[%s1318_s7] sm:$0xff]  ;;  %s1358_s29 = sld [smem:[#allocation17_spill]] }
  0x2d   : > { %450 = vrot.lane.b32.xlu0 %v440_v14, %s1003_s27  ;;  %851 = vmatpush.msra.mxu2 %v440_v14  ;;  %v441_v24 = vld [vmem:[%s1313_s2] sm:$0xff] }
  0x2e   : > { %v561_v26 = vld [vmem:[%s1317_s6] sm:$0xff]  ;;  %832 = vmatmul.msk.f32.vlgmr.msra.gmra.mxu2 %vm575_vm10, %v562_v40 }
  0x2f   : > { %v447_v42 = vld [vmem:[%s1316_s5] sm:$0xff] }
  0x30   : > { %v445_v47 = vld [vmem:[%s1315_s4] sm:$0xff]  ;;  %s371_s20 = sand.u32 1, %s1356_s19  }
  0x31   : > { %v611_v2 = vld [vmem:[%s1320_s9] sm:$0xff]  ;;  %s819_s22 = sshll.u32 %s371_s20, 4  ;;  %s743_s18 = scalar_lea.sflag [#allocation5], %s371_s20 }
  0x32   : > { %v609_v13 = vld [vmem:[%s1319_s8] sm:$0xff]  ;;  %s373_s10 = scalar_lea.vmem [#allocation4], %s819_s22 }
  0x33   : > { %s755_s17 = sshll.u32 %s373_s10, 4  ;;  %s756_s17 = int_to_ptr.vmem [resolvable:$true] %s755_s17 }
  0x34   : > { %526 = vperm.xlu1 %899, %v448_v20  }
  0x3c   : > { %567 = vperm.xlu1 %899, %v563_v21  }
  0x96   : > { %v467_v28 = vpop.permute.xlu1 %466 }
  0x9e   : > { %v462_v32 = vpop.permute.xlu1 %461 }
  0x9f   : > { %v451_v17 = vpop.permute.xlu0 %450 }
  0xa0   : > { %v454_v18 = vsel %vm453_vm7, 0.0, %v451_v17 }
  0xa1   : > { %456 = vrot.lane.b32.xlu0 %v454_v18, %s1005_s14 }
  0xa6   : > { %v527_v49 = vpop.permute.xlu1 %526 }
  0xae   : > { %v568_v54 = vpop.permute.xlu1 %567 }
  0xb1   : > { %v602_v59 = vpop.f32.mrf.mxu2 }
 0x113   : > { %v457_v22 = vpop.permute.xlu0 %456 }
 0x114   : > { %490 = vmatpush.msra.mxu0 %v457_v22  ;;  %v616_v22 = vld [vmem:[%s1355_s0 + $0x8] sm:$0xff] }
 0x116   : > { %822 = vmatpush.msk.msra.mxu0 %vm1167_vm8, %v451_v17 }
 0x117   : > { %823 = vmatmul.msk.f32.vlgmr.msra.gmra.mxu0 %vm469_vm9, %v441_v24  ;;  %v615_v24 = vld [vmem:[%s1355_s0] sm:$0xff] }
 0x118   : > { %597 = vmatpush.msrb.mxu0 %v440_v14  ;;  %v610_v14 = vld [vmem:[%s1319_s8 + $0x8] sm:$0xff] }
 0x11f   : > { %824 = vmatmul.msk.f32.gmra.mxu0 %vm469_vm9, %v442_v25 }
 0x127   : > { %831 = vmatmul.msk.f32.vlgmr.msrb.gmra.mxu0 %vm575_vm10, %v561_v26 }
 0x194   : > { %v493_v27 = vpop.f32.mrf.mxu0 }
 0x195   : > { %v494_v33 = vadd.f32 %v493_v27, %v462_v32 }
 0x197   : > { %v499_v34 = vmax.f32 %v494_v33, 0.0  ;;  %v613_v33 = vld [vmem:[%s1358_s29] sm:$0xff] }
 0x19c   : > { %v496_v29 = vpop.f32.mrf.mxu0 }
 0x19d   : > { %v497_v30 = vadd.f32 %v496_v29, %v467_v28 }
 0x19f   : > { %v500_v31 = vmax.f32 %v497_v30, 0.0 }
 0x1a1   : > { %505 = vrot.lane.b32.xlu2 %v500_v31, %s1003_s27 }
 0x1a4   : > { %v599_v51 = vpop.f32.mrf.mxu0 }
 0x1a5   : > { %v600_v55 = vadd.f32 %v599_v51, %v568_v54 }
 0x1a9   : > { %503 = vrot.lane.b32.xlu2 %v499_v34, %s1003_s27  ;;  %v614_v34 = vld [vmem:[%s1358_s29 + $0x8] sm:$0xff] }
 0x1b1   : > { %521 = vperm.xlu2 %905, %v447_v42  }
 0x1fb   : > { %v506_v35 = vpop.permute.xlu2 %505 }
 0x1fc   : > { %v510_v37 = vsel %vm453_vm7, 0.0, %v506_v35 }
 0x203   : > { %v504_v36 = vpop.permute.xlu2 %503 }
 0x204   : > { %v509_v38 = vsel %vm453_vm7, 0.0, %v504_v36 }
 0x205   : > { %v900_v39 = vpack.i.bf16 %v509_v38, %v510_v37 }
 0x207   : > { %901 = vrot.lane.b32.xlu0 %v900_v39, %s1005_s14 }
 0x20b   : > { %v522_v50 = vpop.permute.xlu2 %521 }
 0x20f   : > { %572 = vperm.xlu0 %906, %v564_v41  }
 0x217   : > { %643 = vperm.xlu0 %906, %v612_v43  }
 0x279   : > { %v902_v44 = vpop.permute.xlu0 %901 }
 0x27a   : > { %v903_v45 = vunpack.i.l.bf16 %v902_v44  ;;  %v904_v46 = vunpack.i.h.bf16 %v902_v44 }
 0x27c   : > { %548 = vmatpush.msra.mxu1 %v903_v45 }
 0x27e   : > { %549 = vmatpush.msra.mxu1 %v904_v46 }
 0x280   : > { %826 = vmatpush.msk.msra.mxu1 %vm1167_vm8, %v506_v35 }
 0x281   : > { %v573_v58 = vpop.permute.xlu0 %572 }
 0x282   : > { %828 = vmatpush.msk.msra.mxu1 %vm1167_vm8, %v504_v36  ;;  %v603_v63 = vadd.f32 %v602_v59, %v573_v58 }
 0x283   : > { %829 = vmatmul.msk.f32.vlgmr.msra.gmra.mxu1 %vm529_vm11, %v445_v47 }
 0x289   : > { %v644_v19 = vpop.permute.xlu0 %643 }
 0x28b   : > { %830 = vmatmul.msk.f32.gmra.mxu1 %vm529_vm11, %v446_v48 }
 0x300   : > { %v553_v52 = vpop.f32.mrf.mxu1 }
 0x301   : > { %v554_v53 = vadd.f32 %v553_v52, %v522_v50 }
 0x303   : > { %v559_v56 = vmax.f32 %v554_v53, 0.0 }
 0x305   : > { %v1215_v57 = vadd.f32 %v600_v55, %v559_v56 }
 0x307   : > { %v607_v60 = vmax.f32 %v1215_v57, 0.0 }
 0x308   : > { %v556_v61 = vpop.f32.mrf.mxu1 }
 0x309   : > { %v557_v62 = vadd.f32 %v556_v61, %v527_v49  ;;  %619 = vrot.lane.b32.xlu1 %v607_v60, %s1006_s24 }
 0x30b   : > { %v560_v0 = vmax.f32 %v557_v62, 0.0 }
 0x30d   : > { %v1221_v1 = vadd.f32 %v603_v63, %v560_v0 }
 0x30f   : > { %v608_v3 = vmax.f32 %v1221_v1, 0.0 }
 0x311   : > { %638 = vperm.xlu1 %899, %v611_v2   ;;  %621 = vrot.lane.b32.xlu2 %v608_v3, %s1006_s24 }
 0x36b   : > { %v622_v4 = vpop.permute.xlu2 %621 }
 0x36c   : > { %v627_v6 = vsel %vm625_vm12, 0.0, %v622_v4 }
 0x37b   : > { %v620_v5 = vpop.permute.xlu1 %619 }
 0x37c   : > { %v626_v7 = vsel %vm625_vm12, 0.0, %v620_v5 }
 0x37d   : > { %v907_v8 = vpack.i.bf16 %v626_v7, %v627_v6 }
 0x37f   : > { %908 = vrot.lane.b32.xlu2 %v907_v8, %s1007_s25 }
 0x383   : > { %v639_v15 = vpop.permute.xlu1 %638 }
 0x3d9   : > { %v909_v9 = vpop.permute.xlu2 %908 }
 0x3da   : > { %v910_v10 = vunpack.i.l.bf16 %v909_v9  ;;  %v911_v11 = vunpack.i.h.bf16 %v909_v9 }
 0x3dc   : > { %664 = vmatpush.msra.mxu3 %v910_v10 }
 0x3de   : > { %665 = vmatpush.msra.mxu3 %v911_v11 }
 0x3e0   : > { %834 = vmatpush.msk.msra.mxu3 %vm1234_vm13, %v622_v4 }
 0x3e2   : > { %836 = vmatpush.msk.msra.mxu3 %vm1234_vm13, %v620_v5 }
 0x3e3   : > { %837 = vmatmul.msk.f32.vlgmr.msra.gmra.mxu3 %vm529_vm11, %v609_v13 }
 0x3eb   : > { %838 = vmatmul.msk.f32.gmra.mxu3 %vm529_vm11, %v610_v14 }
 0x466   : > { %v669_v16 = vpop.f32.mrf.mxu3 }
 0x467   : > { %v670_v17 = vadd.f32 %v669_v16, %v639_v15 }
 0x469   : > { %v675_v18 = vmax.f32 %v670_v17, 0.0 }
 0x46b   : > { %679 = vrot.lane.b32.xlu0 %v675_v18, %s1006_s24 }
 0x46e   : > { %v672_v20 = vpop.f32.mrf.mxu3 }
 0x46f   : > { %v673_v21 = vadd.f32 %v672_v20, %v644_v19 }
 0x471   : > { %v676_v23 = vmax.f32 %v673_v21, 0.0 }
 0x473   : > { %681 = vrot.lane.b32.xlu2 %v676_v23, %s1006_s24  ;;  %702 = vperm.xlu0 %906, %v616_v22   ;;  %s850_s24 = sshll.u32 %s1357_s21, 4 }
 0x47b   : > { %697 = vperm.xlu2 %905, %v615_v24  }
 0x4cd   : > { %v682_v25 = vpop.permute.xlu2 %681 }
 0x4ce   : > { %v686_v27 = vsel %vm625_vm12, 0.0, %v682_v25 }
 0x4d5   : > { %v698_v35 = vpop.permute.xlu2 %697 }
 0x4dd   : > { %v680_v26 = vpop.permute.xlu0 %679 }
 0x4de   : > { %v685_v28 = vsel %vm625_vm12, 0.0, %v680_v26 }
 0x4df   : > { %v912_v29 = vpack.i.bf16 %v685_v28, %v686_v27 }
 0x4e1   : > { %913 = vrot.lane.b32.xlu1 %v912_v29, %s1007_s25  ;;  %s1359_s25 = sld [smem:[#allocation19_spill]] }
 0x4e5   : > { %v703_v41 = vpop.permute.xlu0 %702 }
 0x4e7   : > { %s1360_s30 = smov %s1359_s25  ;;  %s754_s28 = scalar_lea.hbm %s1359_s25, %s850_s24 }
 0x4e8   : > { %s757_s26 = sshll.u32 %s754_s28, 4  ;;  %s956_s27 = scalar_lea.hbm %s1360_s30, 32  ;;  %s758_s26 = int_to_ptr.hbm [resolvable:$true] %s757_s26 }
 0x4e9   : > { %s950_s11 = sshra.s32 %s758_s26, 4  ;;  %s951_s11 = int_to_ptr.hbm [resolvable:$true] %s950_s11 }
 0x4ea   : > { %s952_s19 = scalar_lea.hbm %s951_s11, 16  ;;  %p957_p13 = scmp.lt.s32.totalorder %s951_s11, %s1360_s30 }
 0x4eb   : > { %p953_p10 = scmp.ne.s32.totalorder %s951_s11, %s952_s19  ;;  %p958_p0 = scmp.lt.s32.totalorder %s956_s27, %s952_s19 }
 0x4ed   : > { %p954_p11 = pnand %p953_p10, %p1116_p5  ;;  %p959_p1 = por %p958_p0, %p957_p13 }
 0x4ef   : > { %p955_p12 = pneg %p954_p11 }
 0x4f1   : > { %p960_p2 = pnand %p959_p1, %p955_p12 }
 0x553   : > { %v914_v30 = vpop.permute.xlu1 %913 }
 0x554   : > { %v915_v31 = vunpack.i.l.bf16 %v914_v30  ;;  %v916_v32 = vunpack.i.h.bf16 %v914_v30 }
 0x556   : > { %723 = vmatpush.msrb.mxu2 %v915_v31 }
 0x558   : > { %724 = vmatpush.msrb.mxu2 %v916_v32 }
 0x55a   : > { %840 = vmatpush.msk.msrb.mxu2 %vm1234_vm13, %v682_v25 }
 0x55c   : > { %842 = vmatpush.msk.msrb.mxu2 %vm1234_vm13, %v680_v26 }
 0x55d   : > { %843 = vmatmul.msk.f32.vlgmr.msrb.gmra.mxu2 %vm529_vm11, %v613_v33 }
 0x565   : > { %844 = vmatmul.msk.f32.gmra.mxu2 %vm529_vm11, %v614_v34 }
 0x5e0   : > { %v728_v36 = vpop.f32.mrf.mxu2 }
 0x5e1   : > { %v729_v37 = vadd.f32 %v728_v36, %v698_v35 }
 0x5e3   : > { %v734_v38 = vmax.f32 %v729_v37, 0.0 }
 0x5e5   : > { %v736_v39 = vadd.f32 %v734_v38, %v607_v60 }
 0x5e7   : > { %v738_v40 = vmax.f32 %v736_v39, 0.0 }
 0x5e8   : > { %v731_v42 = vpop.f32.mrf.mxu2 }
 0x5e9   : > { %740 = vst.msk [vmem:[%s373_s10] sm:$0xff] %vm469_vm9, %v738_v40  ;;  %v732_v43 = vadd.f32 %v731_v42, %v703_v41 }
 0x5eb   : > { %v735_v44 = vmax.f32 %v732_v43, 0.0 }
 0x5ed   : > { %v737_v45 = vadd.f32 %v735_v44, %v608_v3 }
 0x5ef   : > { %v739_v46 = vmax.f32 %v737_v45, 0.0 }
 0x5f1   : > { %741 = vst.msk [vmem:[%s373_s10 + $0x8] sm:$0xff] %vm469_vm9, %v739_v46 }
 0x5f2   : > { %963 = shalt.err (!%p960_p2)
}
 0x5f3   : > { %s1008_s20 = smov 128   ;;  %s1009_s22 = smov 8  }
 0x5f4   : > { %852 = dma.vmem_to_hbm [thread:$0]  (%p1116_p5), %s756_s17, 256, %s758_s26, %s743_s18, %s1008_s20, %s1008_s20, %s1009_s22  }
 0x5f5 PF: > { %s1362_s24 = sld [smem:[#allocation11_spill]] }
 0x5f6   : > { %s1363_s13 = sld [smem:[#allocation8_spill]] }
 0x5fb   : > { %p858_p3 = scmp.ge.s32.totalorder %s1362_s24, 2 }
 0x5fc   : > { %s772_s25 = sand.u32 1, %s1363_s13  }
 0x5fd   : > { %p855_p4 = pnand %p858_p3, %p1120_p6  ;;  %s773_s28 = scalar_lea.sflag [#allocation5], %s772_s25 }
 0x5ff   : > { %p856_p7 = pneg %p855_p4 }
 0x601   : > { %983 = dma.done.wait (%p856_p7), %s773_s28, 256  }
 0x602   : > { %985 = vsyncadd (%p856_p7), %s773_s28, 4294967040  ;;  %s1365_s28 = sld [smem:[#allocation13_spill]] }
 0x603   : > { %s1366_s25 = sld [smem:[#allocation9_spill]] }
 0x604   : > { %s1367_s26 = sld [smem:[#allocation10_spill]] }
 0x605   : > { %s1368_s27 = sld [smem:[#allocation14_spill]] }
 0x608   : > { %p30_p8 = scmp.ge.s32.totalorder %s1365_s28, 4  }
 0x60a   :  { %32 = sbr.rel (!%p30_p8) target bundleno = 11 (0xb), region = 104 }
 0x60f   :  { %779 = vsyncpa [#allocation5], 1 }
 0x610   :  { %781 = vsyncpa [#allocation5 + $0x1], 1 }

</bundles_post_ra>
